<compile_context>
chip_gen: v5e
topology: v5e:2x2
jax: 0.10.0
libtpu: 0.0.40
codegen_flags: <defaults>
</compile_context>

<pallas_src>
import functools

import jax
import jax.numpy as jnp
from jax import lax
from jax.experimental import pallas as pl
from jax.experimental.pallas import tpu as pltpu


def _round_up(x, m):
    return (x + m - 1) // m * m


def _maybe_pad(x, pads):
    if all(lo == 0 and hi == 0 for lo, hi in pads):
        return x
    return jnp.pad(x, pads)


def _vmem_capacity_bytes():
    try:
        info = pltpu.get_tpu_info()
        cap = getattr(info, "vmem_capacity_bytes", None)
        if cap:
            return int(cap)
    except Exception:
        pass
    return 64 * 1024 * 1024  # conservative default (v7x-sized VMEM)


def gin_plan(N, F, H, *, tm_max=None, vmem_limit_bytes=None):
    """Tiling / precision plan for gin_conv, derived from shapes + chip VMEM."""
    FP = _round_up(F, 128)           # lane-dense MXU tiles, unmasked output stores
    HP = _round_up(H, 128)
    reassoc = H <= F                 # contract the O(N^2) matmul over the smaller dim
    CP = HP if reassoc else FP       # width of the resident per-batch operand

    vmem_cap = _vmem_capacity_bytes()
    if vmem_limit_bytes is None:
        # ~100 MiB on 128 MiB parts (v5e/v6e), ~48 MiB on 64 MiB parts (v7x).
        vmem_limit_bytes = min(int(vmem_cap * 3 // 4), 100 * 1024 * 1024)

    if tm_max is None:
        # TM=256 matches the 256x256 MXU (v6e/v7x) and halves grid-step overhead;
        # on small-VMEM parts only take it when the resident operand is the
        # reassociated (H-wide) one.  TM=128 matches v5e's 128x128 MXU.
        tm_max = 256 if (vmem_cap >= 96 * 1024 * 1024 or reassoc) else 128

    def _tiles(tm_cap):
        if N >= tm_cap:
            return tm_cap, _round_up(N, tm_cap)
        npad = _round_up(N, 16)      # bf16 sublane granule
        return npad, npad

    TM, NP = _tiles(tm_max)

    def _vmem_estimate(tm, npad):
        est = 2 * tm * npad * 2          # streamed A row blocks (bf16, double-buffered)
        est += 2 * npad * CP * 2         # resident X/Z operand (bf16, double-buffered)
        est += 2 * tm * CP * 4           # streamed self-term rows (f32)
        est += 2 * tm * HP * 4           # output blocks
        if not reassoc:
            est += 2 * FP * HP * 4       # resident W (f32)
        est += 16 * HP * 4               # bias / mask / gamma / beta
        return est

    if TM > 128 and _vmem_estimate(TM, NP) > vmem_limit_bytes:
        TM, NP = _tiles(128)
    # TODO(synk): K-tile the node (contraction) axis with an f32 accumulator if even
    # TM=128 overflows VMEM (very large N * min(F, H)).

    return dict(tm=TM, np=NP, fp=FP, hp=HP, reassoc=reassoc,
                vmem_limit_bytes=int(vmem_limit_bytes))


def prepare_adjacency(A, plan):
    """Pad A to the plan's node granule and cast to bf16.

    Hoisted out of the per-layer path: the adjacency is reused across GIN
    layers, so pad/cast it once per graph.  bf16 is exact for 0/1 (or
    power-of-two) edge weights; weighted adjacencies lose precision here.
    """
    B, N, _ = A.shape
    NP = plan["np"]
    Ap = _maybe_pad(A, ((0, 0), (0, NP - N), (0, NP - N)))
    return Ap.astype(jnp.bfloat16)


def _gelu_layernorm_store(y, mask, gamma, beta, o_ref, h_true):
    # Exact (erf) GeLU — matches torch.nn.functional.gelu default.
    g = 0.5 * y * (1.0 + lax.erf(y * 0.7071067811865476))
    # LayerNorm over the true hidden width.  Padded columns of g are exactly 0,
    # so only the variance sum needs the precomputed (1, HP) mask.
    inv_h = 1.0 / h_true
    mean = jnp.sum(g, axis=-1, keepdims=True) * inv_h
    diff = g - mean
    var = jnp.sum(diff * diff * mask, axis=-1, keepdims=True) * inv_h
    normed = diff * lax.rsqrt(var + 1e-5)
    o_ref[...] = (normed * gamma + beta).astype(o_ref.dtype)


def _gin_kernel_reassoc(eps_ref, zrow_ref, a_ref, z_ref, b_ref, mask_ref,
                        gamma_ref, beta_ref, o_ref, *, h_true):
    # Reassociated form (H <= F), Z = X @ W precomputed in the wrapper:
    #   (X + (1+eps) A X) W + b  ==  Z + (1+eps) A Z + b
    eps = eps_ref[0]
    # bf16 x bf16 MXU matmul, f32 accumulation, for the O(N^2) aggregation.
    az = jnp.dot(a_ref[...], z_ref[...], preferred_element_type=jnp.float32)
    y = zrow_ref[...] + (1.0 + eps) * az + b_ref[...]
    _gelu_layernorm_store(y, mask_ref[...], gamma_ref[...], beta_ref[...],
                          o_ref, h_true)


def _gin_kernel_fused(eps_ref, xrow_ref, a_ref, x_ref, w_ref, b_ref, mask_ref,
                      gamma_ref, beta_ref, o_ref, *, h_true):
    # Direct form (H > F): aggregate on X, then the (smaller) Linear in-kernel.
    eps = eps_ref[0]
    ax = jnp.dot(a_ref[...], x_ref[...], preferred_element_type=jnp.float32)
    h = xrow_ref[...] + (1.0 + eps) * ax
    # Linear kept in f32 — O(N·F·H), small next to the O(N^2·F) aggregation.
    y = jnp.dot(h, w_ref[...], preferred_element_type=jnp.float32) + b_ref[...]
    _gelu_layernorm_store(y, mask_ref[...], gamma_ref[...], beta_ref[...],
                          o_ref, h_true)


def gin_conv(X, A, eps, W, b, gamma, beta, *, plan=None):
    """GINConv forward.  `A` may be the raw (B, N, N) adjacency or the output
    of prepare_adjacency() (preferred — reuse it across layers)."""
    B, N, F = X.shape
    H = W.shape[1]
    if plan is None:
        plan = gin_plan(N, F, H)
    TM, NP, FP, HP = plan["tm"], plan["np"], plan["fp"], plan["hp"]
    reassoc = plan["reassoc"]

    if A.dtype == jnp.bfloat16 and A.shape == (B, NP, NP):
        Ap = A
    else:
        Ap = prepare_adjacency(A, plan)

    bp = _maybe_pad(b, ((0, HP - H),)).reshape(1, HP)
    gp = _maybe_pad(gamma, ((0, HP - H),)).reshape(1, HP)
    bep = _maybe_pad(beta, ((0, HP - H),)).reshape(1, HP)
    mask = (jnp.arange(HP, dtype=jnp.int32) < H).astype(jnp.float32).reshape(1, HP)

    small_specs = [
        pl.BlockSpec((1, HP), lambda bi, i: (0, 0)),  # bias
        pl.BlockSpec((1, HP), lambda bi, i: (0, 0)),  # layernorm mask
        pl.BlockSpec((1, HP), lambda bi, i: (0, 0)),  # gamma
        pl.BlockSpec((1, HP), lambda bi, i: (0, 0)),  # beta
    ]

    if reassoc:
        # Z = X @ W precomputed by XLA (contracts over the larger F once);
        # the kernel's O(N^2) matmul then contracts over H only and the
        # resident per-batch operand shrinks to NP x HP (bf16).
        Z = jnp.einsum("bnf,fh->bnh", X, W)
        Zp = _maybe_pad(Z, ((0, 0), (0, NP - N), (0, HP - H)))
        Zbf = Zp.astype(jnp.bfloat16)      # MXU operand; self term stays f32
        kernel = functools.partial(_gin_kernel_reassoc, h_true=H)
        operands = (eps, Zp, Ap, Zbf, bp, mask, gp, bep)
        in_specs = [
            pl.BlockSpec(memory_space=pltpu.MemorySpace.SMEM),                # eps scalar
            pl.BlockSpec((pl.Squeezed(), TM, HP), lambda bi, i: (bi, i, 0)),  # Z rows (f32 self term)
            pl.BlockSpec((pl.Squeezed(), TM, NP), lambda bi, i: (bi, i, 0)),  # A row block (bf16)
            pl.BlockSpec((pl.Squeezed(), NP, HP), lambda bi, i: (bi, 0, 0)),  # Z resident (bf16)
        ] + small_specs
    else:
        Xp = _maybe_pad(X, ((0, 0), (0, NP - N), (0, FP - F)))
        Xbf = Xp.astype(jnp.bfloat16)
        Wp = _maybe_pad(W, ((0, FP - F), (0, HP - H)))
        kernel = functools.partial(_gin_kernel_fused, h_true=H)
        operands = (eps, Xp, Ap, Xbf, Wp, bp, mask, gp, bep)
        in_specs = [
            pl.BlockSpec(memory_space=pltpu.MemorySpace.SMEM),                # eps scalar
            pl.BlockSpec((pl.Squeezed(), TM, FP), lambda bi, i: (bi, i, 0)),  # X rows (f32 self term)
            pl.BlockSpec((pl.Squeezed(), TM, NP), lambda bi, i: (bi, i, 0)),  # A row block (bf16)
            pl.BlockSpec((pl.Squeezed(), NP, FP), lambda bi, i: (bi, 0, 0)),  # X resident (bf16)
            pl.BlockSpec((FP, HP), lambda bi, i: (0, 0)),                     # W (f32, resident)
        ] + small_specs
    # TODO(synk): consider pipeline_mode=pl.Buffered(1) on the grid-invariant resident
    # specs and Buffered(3) on the A stream once profiling confirms the DMA regime.

    out = pl.pallas_call(
        kernel,
        out_shape=jax.ShapeDtypeStruct((B, NP, HP), X.dtype),
        grid_spec=pl.GridSpec(
            grid=(B, NP // TM),
            in_specs=in_specs,
            out_specs=pl.BlockSpec((pl.Squeezed(), TM, HP), lambda bi, i: (bi, i, 0)),
        ),
        compiler_params=pltpu.CompilerParams(
            dimension_semantics=("parallel", "parallel"),
            vmem_limit_bytes=plan["vmem_limit_bytes"],
        ),
    )(*operands)

    return out[:, :N, :H]


def gin_conv_ref(X, A, eps, W, b, gamma, beta):
    h = X + (1.0 + eps[0]) * jnp.einsum("bij,bjf->bif", A, X)
    y = jnp.einsum("bnf,fh->bnh", h, W) + b
    g = 0.5 * y * (1.0 + lax.erf(y / jnp.sqrt(2.0)))
    mean = jnp.mean(g, axis=-1, keepdims=True)
    var = jnp.mean((g - mean) ** 2, axis=-1, keepdims=True)
    return (g - mean) * lax.rsqrt(var + 1e-5) * gamma + beta


if __name__ == "__main__":
    key = jax.random.PRNGKey(0)
    # Two small configs so both kernel paths execute on device:
    #   F < H  -> fused in-kernel Linear;   F >= H -> reassociated A @ (X W).
    for (B, N, F, H) in [(2, 8, 16, 32), (2, 8, 32, 16)]:
        key, kx, ka, kw = jax.random.split(key, 4)
        X = jax.random.normal(kx, (B, N, F), dtype=jnp.float32)
        A_raw = (jax.random.uniform(ka, (B, N, N)) > 0.5).astype(jnp.float32)
        A = jnp.maximum(A_raw, jnp.transpose(A_raw, (0, 2, 1)))   # symmetric 0/1 adjacency

        eps = jnp.zeros((1,), dtype=jnp.float32)                     # nn.Parameter(torch.zeros(1))
        W = 0.1 * jax.random.normal(kw, (F, H), dtype=jnp.float32)   # Linear weight, (in, out) layout
        b = jnp.zeros((H,), dtype=jnp.float32)                       # Linear bias
        gamma = jnp.ones((H,), dtype=jnp.float32)                    # LayerNorm weight
        beta = jnp.zeros((H,), dtype=jnp.float32)                    # LayerNorm bias

        plan = gin_plan(N, F, H)
        Ap = prepare_adjacency(A, plan)    # hoisted once per graph; reused across GIN layers

        out = jax.block_until_ready(gin_conv(X, Ap, eps, W, b, gamma, beta, plan=plan))
        ref = gin_conv_ref(X, A, eps, W, b, gamma, beta)
        assert out.shape == (B, N, H)
        # bf16 MXU operands -> slightly relaxed tolerance vs the all-f32 reference.
        err = jnp.max(jnp.abs(out - ref))
        assert jnp.allclose(out, ref, atol=3e-2, rtol=3e-2), \
            f"mismatch for (B,N,F,H)={(B, N, F, H)}: max abs err {err}"
    print("KERNEL_OK")
</pallas_src>

<mosaic_0001>
module attributes {stable_mosaic.version = 11 : i64} {
  func.func @_gin_kernel_fused(%arg0: i32, %arg1: i32, %arg2: memref<1xf32, #tpu.memory_space<smem>>, %arg3: memref<1x16x128xf32, #tpu.memory_space<vmem>>, %arg4: memref<1x16x16xbf16, #tpu.memory_space<vmem>>, %arg5: memref<1x16x128xbf16, #tpu.memory_space<vmem>>, %arg6: memref<128x128xf32, #tpu.memory_space<vmem>>, %arg7: memref<1x128xf32, #tpu.memory_space<vmem>>, %arg8: memref<1x128xf32, #tpu.memory_space<vmem>>, %arg9: memref<1x128xf32, #tpu.memory_space<vmem>>, %arg10: memref<1x128xf32, #tpu.memory_space<vmem>>, %arg11: memref<1x16x128xf32, #tpu.memory_space<vmem>>) attributes {dimension_semantics = [#tpu.dimension_semantics<parallel>, #tpu.dimension_semantics<parallel>], iteration_bounds = array<i64: 2, 1>, scalar_prefetch = 0 : i64, scratch_operands = 0 : i64, tpu.core_type = #tpu.core_type<tc>, window_params = [{transform_indices = @transform_0, window_bounds = array<i64: 1>}, {transform_indices = @transform_1, window_bounds = array<i64: 1, 16, 128>}, {transform_indices = @transform_2, window_bounds = array<i64: 1, 16, 16>}, {transform_indices = @transform_3, window_bounds = array<i64: 1, 16, 128>}, {pipeline_mode = #tpu.pipeline_mode<synchronous>, transform_indices = @transform_4, window_bounds = array<i64: 128, 128>}, {pipeline_mode = #tpu.pipeline_mode<synchronous>, transform_indices = @transform_5, window_bounds = array<i64: 1, 128>}, {pipeline_mode = #tpu.pipeline_mode<synchronous>, transform_indices = @transform_6, window_bounds = array<i64: 1, 128>}, {pipeline_mode = #tpu.pipeline_mode<synchronous>, transform_indices = @transform_7, window_bounds = array<i64: 1, 128>}, {pipeline_mode = #tpu.pipeline_mode<synchronous>, transform_indices = @transform_8, window_bounds = array<i64: 1, 128>}, {transform_indices = @transform_9, window_bounds = array<i64: 1, 16, 128>}]} {
    %c0 = arith.constant 0 : index
    %0 = memref.load %arg2[%c0] : memref<1xf32, #tpu.memory_space<smem>>
    %c0_0 = arith.constant 0 : index
    %c0_1 = arith.constant 0 : index
    %c0_2 = arith.constant 0 : index
    %1 = vector.load %arg4[%c0_0, %c0_1, %c0_2] : memref<1x16x16xbf16, #tpu.memory_space<vmem>>, vector<1x16x16xbf16>
    %2 = vector.shape_cast %1 : vector<1x16x16xbf16> to vector<16x16xbf16>
    %c0_3 = arith.constant 0 : index
    %c0_4 = arith.constant 0 : index
    %c0_5 = arith.constant 0 : index
    %3 = vector.load %arg5[%c0_3, %c0_4, %c0_5] : memref<1x16x128xbf16, #tpu.memory_space<vmem>>, vector<1x16x128xbf16>
    %4 = vector.shape_cast %3 : vector<1x16x128xbf16> to vector<16x128xbf16>
    %cst = arith.constant dense<0.000000e+00> : vector<16x128xf32>
    %5 = tpu.matmul %2, %4, %cst {dimension_numbers = #tpu.dot_dimension_numbers<[1], [0], [0], [1], [0, 0, 1, 1], [], []>} : vector<16x16xbf16>, vector<16x128xbf16>, vector<16x128xf32> -> vector<16x128xf32>
    %c0_6 = arith.constant 0 : index
    %c0_7 = arith.constant 0 : index
    %c0_8 = arith.constant 0 : index
    %6 = vector.load %arg3[%c0_6, %c0_7, %c0_8] : memref<1x16x128xf32, #tpu.memory_space<vmem>>, vector<1x16x128xf32>
    %7 = vector.shape_cast %6 : vector<1x16x128xf32> to vector<16x128xf32>
    %cst_9 = arith.constant 1.000000e+00 : f32
    %8 = arith.addf %cst_9, %0 : f32
    %9 = vector.broadcast %8 : f32 to vector<16x128xf32>
    %10 = arith.mulf %9, %5 : vector<16x128xf32>
    %11 = arith.addf %7, %10 : vector<16x128xf32>
    %c0_10 = arith.constant 0 : index
    %c0_11 = arith.constant 0 : index
    %12 = vector.load %arg6[%c0_10, %c0_11] : memref<128x128xf32, #tpu.memory_space<vmem>>, vector<128x128xf32>
    %cst_12 = arith.constant dense<0.000000e+00> : vector<16x128xf32>
    %13 = tpu.matmul %11, %12, %cst_12 {dimension_numbers = #tpu.dot_dimension_numbers<[1], [0], [0], [1], [0, 0, 1, 1], [], []>} : vector<16x128xf32>, vector<128x128xf32>, vector<16x128xf32> -> vector<16x128xf32>
    %c0_13 = arith.constant 0 : index
    %c0_14 = arith.constant 0 : index
    %14 = vector.load %arg7[%c0_13, %c0_14] : memref<1x128xf32, #tpu.memory_space<vmem>>, vector<1x128xf32>
    %15 = vector.broadcast %14 : vector<1x128xf32> to vector<16x128xf32>
    %16 = arith.addf %13, %15 : vector<16x128xf32>
    %c0_15 = arith.constant 0 : index
    %c0_16 = arith.constant 0 : index
    %17 = vector.load %arg8[%c0_15, %c0_16] : memref<1x128xf32, #tpu.memory_space<vmem>>, vector<1x128xf32>
    %c0_17 = arith.constant 0 : index
    %c0_18 = arith.constant 0 : index
    %18 = vector.load %arg9[%c0_17, %c0_18] : memref<1x128xf32, #tpu.memory_space<vmem>>, vector<1x128xf32>
    %c0_19 = arith.constant 0 : index
    %c0_20 = arith.constant 0 : index
    %19 = vector.load %arg10[%c0_19, %c0_20] : memref<1x128xf32, #tpu.memory_space<vmem>>, vector<1x128xf32>
    %cst_21 = arith.constant 5.000000e-01 : f32
    %20 = vector.broadcast %cst_21 : f32 to vector<16x128xf32>
    %21 = arith.mulf %20, %16 : vector<16x128xf32>
    %cst_22 = arith.constant 0.707106769 : f32
    %22 = vector.broadcast %cst_22 : f32 to vector<16x128xf32>
    %23 = arith.mulf %16, %22 : vector<16x128xf32>
    %24 = math.erf %23 : vector<16x128xf32>
    %cst_23 = arith.constant 1.000000e+00 : f32
    %25 = vector.broadcast %cst_23 : f32 to vector<16x128xf32>
    %26 = arith.addf %25, %24 : vector<16x128xf32>
    %27 = arith.mulf %21, %26 : vector<16x128xf32>
    %cst_24 = arith.constant dense<0.000000e+00> : vector<16xf32>
    %28 = vector.multi_reduction <add>, %27, %cst_24 [1] : vector<16x128xf32> to vector<16xf32>
    %29 = vector.shape_cast %28 : vector<16xf32> to vector<16x1xf32>
    %cst_25 = arith.constant 3.125000e-02 : f32
    %30 = vector.broadcast %cst_25 : f32 to vector<16x1xf32>
    %31 = arith.mulf %29, %30 : vector<16x1xf32>
    %32 = vector.broadcast %31 : vector<16x1xf32> to vector<16x128xf32>
    %33 = arith.subf %27, %32 : vector<16x128xf32>
    %34 = arith.mulf %33, %33 : vector<16x128xf32>
    %35 = vector.broadcast %17 : vector<1x128xf32> to vector<16x128xf32>
    %36 = arith.mulf %34, %35 : vector<16x128xf32>
    %cst_26 = arith.constant dense<0.000000e+00> : vector<16xf32>
    %37 = vector.multi_reduction <add>, %36, %cst_26 [1] : vector<16x128xf32> to vector<16xf32>
    %38 = vector.shape_cast %37 : vector<16xf32> to vector<16x1xf32>
    %cst_27 = arith.constant 3.125000e-02 : f32
    %39 = vector.broadcast %cst_27 : f32 to vector<16x1xf32>
    %40 = arith.mulf %38, %39 : vector<16x1xf32>
    %cst_28 = arith.constant 9.99999974E-6 : f32
    %41 = vector.broadcast %cst_28 : f32 to vector<16x1xf32>
    %42 = arith.addf %40, %41 : vector<16x1xf32>
    %43 = math.rsqrt %42 : vector<16x1xf32>
    %44 = vector.broadcast %43 : vector<16x1xf32> to vector<16x128xf32>
    %45 = arith.mulf %33, %44 : vector<16x128xf32>
    %46 = vector.broadcast %18 : vector<1x128xf32> to vector<16x128xf32>
    %47 = arith.mulf %45, %46 : vector<16x128xf32>
    %48 = vector.broadcast %19 : vector<1x128xf32> to vector<16x128xf32>
    %49 = arith.addf %47, %48 : vector<16x128xf32>
    %c0_29 = arith.constant 0 : index
    %c0_30 = arith.constant 0 : index
    %c0_31 = arith.constant 0 : index
    %50 = vector.load %arg11[%c0_29, %c0_30, %c0_31] : memref<1x16x128xf32, #tpu.memory_space<vmem>>, vector<1x16x128xf32>
    %51 = vector.shape_cast %50 : vector<1x16x128xf32> to vector<16x128xf32>
    %52 = vector.shape_cast %49 : vector<16x128xf32> to vector<1x16x128xf32>
    tpu.vector_store %arg11[%c0_29, %c0_30, %c0_31], %52 {strides = array<i32>} : memref<1x16x128xf32, #tpu.memory_space<vmem>>, vector<1x16x128xf32>,
    return
  }
  func.func @transform_0(%arg0: i32, %arg1: i32) -> i32 {
    %c0_i32 = arith.constant 0 : i32
    %c0_i32_0 = arith.constant 0 : i32
    return %c0_i32 : i32
  }
  func.func @transform_1(%arg0: i32, %arg1: i32) -> (i32, i32, i32) {
    %c0_i32 = arith.constant 0 : i32
    %c0_i32_0 = arith.constant 0 : i32
    return %arg0, %arg1, %c0_i32 : i32, i32, i32
  }
  func.func @transform_2(%arg0: i32, %arg1: i32) -> (i32, i32, i32) {
    %c0_i32 = arith.constant 0 : i32
    %c0_i32_0 = arith.constant 0 : i32
    return %arg0, %arg1, %c0_i32 : i32, i32, i32
  }
  func.func @transform_3(%arg0: i32, %arg1: i32) -> (i32, i32, i32) {
    %c0_i32 = arith.constant 0 : i32
    %c0_i32_0 = arith.constant 0 : i32
    %c0_i32_1 = arith.constant 0 : i32
    return %arg0, %c0_i32, %c0_i32_0 : i32, i32, i32
  }
  func.func @transform_4(%arg0: i32, %arg1: i32) -> (i32, i32) {
    %c0_i32 = arith.constant 0 : i32
    %c0_i32_0 = arith.constant 0 : i32
    %c0_i32_1 = arith.constant 0 : i32
    return %c0_i32, %c0_i32_0 : i32, i32
  }
  func.func @transform_5(%arg0: i32, %arg1: i32) -> (i32, i32) {
    %c0_i32 = arith.constant 0 : i32
    %c0_i32_0 = arith.constant 0 : i32
    %c0_i32_1 = arith.constant 0 : i32
    return %c0_i32, %c0_i32_0 : i32, i32
  }
  func.func @transform_6(%arg0: i32, %arg1: i32) -> (i32, i32) {
    %c0_i32 = arith.constant 0 : i32
    %c0_i32_0 = arith.constant 0 : i32
    %c0_i32_1 = arith.constant 0 : i32
    return %c0_i32, %c0_i32_0 : i32, i32
  }
  func.func @transform_7(%arg0: i32, %arg1: i32) -> (i32, i32) {
    %c0_i32 = arith.constant 0 : i32
    %c0_i32_0 = arith.constant 0 : i32
    %c0_i32_1 = arith.constant 0 : i32
    return %c0_i32, %c0_i32_0 : i32, i32
  }
  func.func @transform_8(%arg0: i32, %arg1: i32) -> (i32, i32) {
    %c0_i32 = arith.constant 0 : i32
    %c0_i32_0 = arith.constant 0 : i32
    %c0_i32_1 = arith.constant 0 : i32
    return %c0_i32, %c0_i32_0 : i32, i32
  }
  func.func @transform_9(%arg0: i32, %arg1: i32) -> (i32, i32, i32) {
    %c0_i32 = arith.constant 0 : i32
    %c0_i32_0 = arith.constant 0 : i32
    return %arg0, %arg1, %c0_i32 : i32, i32, i32
  }
}

</mosaic_0001>

<bundles_post_ra>
// kernel: tpu_custom_call.1
= control target key start
LH: loop header
LB: loop body
LE: loop exit
PB: predicated region body
PF: predicated region fallthrough
CT: control target
= control target key end

     0   :  { %s1524_s0 = inlined_call_operand.<no memory space> [shape: f32[1], index: 0, kind: input, shape index: {}]   ;;  %s1525_s1 = inlined_call_operand.hbm [shape: f32[2,16,128], index: 1, kind: input, shape index: {}]   ;;  %s1526_s2 = inlined_call_operand.hbm [shape: bf16[2,16,16], index: 2, kind: input, shape index: {}]   ;;  %s1527_s3 = inlined_call_operand.hbm [shape: bf16[2,16,128], index: 3, kind: input, shape index: {}]   ;;  %s1528_s4 = inlined_call_operand.hbm [shape: f32[128,128], index: 4, kind: input, shape index: {}]   ;;  %s1529_s5 = inlined_call_operand.vmem [shape: f32[1,128], index: 5, kind: input, shape index: {}]   ;;  %s1530_s6 = inlined_call_operand.vmem [shape: f32[1,128], index: 6, kind: input, shape index: {}]   ;;  %s1531_s7 = inlined_call_operand.vmem [shape: f32[1,128], index: 7, kind: input, shape index: {}]   ;;  %s1532_s8 = inlined_call_operand.vmem [shape: f32[1,128], index: 8, kind: input, shape index: {}]   ;;  %s1533_s9 = inlined_call_operand.hbm [shape: f32[2,16,128], index: 9, kind: output, shape index: {}]  }
   0x1   :  { %1545 = sst [smem:[#allocation23_spill]] %s1526_s2 }
   0x2   :  { %1546 = sst [smem:[#allocation24_spill]] %s1527_s3 }
   0x3   :  { %1547 = sst [smem:[#allocation25_spill]] %s1528_s4 }
   0x4   :  { %1548 = sst [smem:[#allocation26_spill]] %s1533_s9 }
   0x5   :  { %14 = sst [smem:[#allocation2]] %s1524_s0 }
   0x6   :  { %15 = vsyncpa [#allocation4], 0 }
   0x7   :  { %17 = vsyncpa [#allocation4 + $0x1], 0 }
   0x8   :  { %18 = vsyncpa [#allocation7], 0 }
   0x9   :  { %20 = vsyncpa [#allocation7 + $0x1], 0 }
   0xa   :  { %21 = vsyncpa [#allocation10], 0 }
   0xb   :  { %22 = vsyncpa [#allocation5], 0 }
   0xc   :  { %24 = vsyncpa [#allocation5 + $0x1], 0  ;;  %s1303_s11 = smov 0   ;;  %s1305_s12 = smov 0  }
   0xd   :  { %s1307_s13 = smov 0   ;;  %s1309_s14 = smov 0  }
   0xe   :  { %s1311_s15 = smov 0   ;;  %s1313_s16 = smov 0  }
   0xf LB: > { %1549 = sst [smem:[#allocation16_spill]] %s1221_s11  ;;  %s42_s0 = sadd.s32 1, %s1237_s15  ;;  %s1241_s16 = sphi %s1313_s16, %s30_s16   ;;  %s1237_s15 = sphi %s1311_s15, %s1578_s15   ;;  %s1233_s14 = sphi %s1309_s14, %s1577_s14   ;;  %s1229_s13 = sphi %s1307_s13, %s1573_s13   ;;  %s1225_s12 = sphi %s1305_s12, %s1576_s12   ;;  %s1221_s11 = sphi %s1303_s11, %s1575_s11  }
  0x10   : > { %1550 = sst [smem:[#allocation17_spill]] %s1229_s13  ;;  %s72_s17 = sadd.s32 1, %s1229_s13 }
  0x11   : > { %1551 = sst [smem:[#allocation18_spill]] %s1241_s16  ;;  %p44_p0 = scmp.ge.s32.totalorder %s42_s0, 2 }
  0x12   : > { %p79_p1 = scmp.ne.s32.totalorder %s1229_s13, %s1225_s12  ;;  %p80_p2 = scmp.eq.s32.totalorder %s1241_s16, 0 }
  0x13   : > { %p876_p3 = scmp.ge.s32.totalorder %s1241_s16, 2  ;;  %s1580_s0 = smov (%p44_p0, %s42_s0), 0 }
  0x14   : > { %1552 = sst [smem:[#allocation19_spill]] %s1580_s0  ;;  %p81_p4 = por %p80_p2, %p79_p1 }
  0x15   : > { %p961_p5 = scmp.lt.s32.totalorder %s1241_s16, 2  ;;  %s67_s18 = ssub.s32 %s1237_s15, %s1580_s0 }
  0x16   : > { %s1348_s19 = sand.u32 1, %s1229_s13   ;;  %p70_p6 = scmp.eq.s32.totalorder %s67_s18, 0 }
  0x17   : > { %p1350_p7 = pnand %p961_p5, %p81_p4  ;;  %s349_s21 = sand.u32 1, %s1241_s16  }
  0x18   : > { %s880_s22 = sshll.u32 %s1348_s19, 3  ;;  %s909_s24 = sshll.u32 %s1237_s15, 3 }
  0x19   : > { %s1357_s23 = scalar_select %p70_p6, %s1229_s13, %s72_s17  }
  0x1a   : > { %s1555_s2 = sld [smem:[#allocation23_spill]]  ;;  %s353_s28 = scalar_lea.vmem [#allocation6], %s880_s22 }
  0x1b   : > { %1554 = sst [smem:[#allocation20_spill]] %s1357_s23  ;;  %s363_s29 = sshll.u32 %s353_s28, 4  ;;  %s364_s29 = int_to_ptr.vmem [resolvable:$true] %s363_s29 }
  0x1c   : > { %s1363_s10 = scalar_lea.sflag [#allocation7], %s349_s21  ;;  %s1535_s17 = smov 64  }
  0x1d   : > { %s1536_s18 = smov 4   ;;  %s1556_s3 = sld [smem:[#allocation24_spill]] }
  0x1e   : > { %s1379_s0 = sadd.s32 4294967295, %s1241_s16   ;;  %s873_s23 = sadd.s32 4294967294, %s1241_s16  }
  0x1f   : > { %p85_p8 = scmp.ne.s32.totalorder %s1225_s12, %s1221_s11  ;;  %p86_p9 = scmp.eq.s32.totalorder %s1379_s0, 0 }
  0x20   : > { %s360_s27 = scalar_lea.hbm %s1555_s2, %s909_s24  ;;  %p270_p10 = scmp.eq.s32.totalorder %s1379_s0, 1 }
  0x21   : > { %s361_s30 = sshll.u32 %s360_s27, 4  ;;  %s377_s27 = scalar_lea.vmem [#allocation8], %s880_s22  ;;  %s362_s30 = int_to_ptr.hbm [resolvable:$true] %s361_s30 }
  0x22   : > { %952 = dma.hbm_to_vmem [thread:$0]  (!%p1350_p7), %s362_s30, 128, %s364_s29, %s1363_s10, %s1535_s17, %s1535_s17, %s1536_s18  }
  0x23   : > { %s382_s28 = scalar_lea.hbm %s1556_s3, %s909_s24  ;;  %s385_s2 = sshll.u32 %s377_s27, 4  ;;  %s1374_s2 = int_to_ptr.vmem [resolvable:$true] %s385_s2 }
  0x24   : > { %s383_s21 = sshll.u32 %s382_s28, 4  ;;  %p276_p11 = scmp.eq.s32.totalorder %s873_s23, 1  ;;  %s1376_s21 = int_to_ptr.hbm [resolvable:$true] %s383_s21 }
  0x25   : > { %p874_p12 = scmp.ge.s32.totalorder %s1241_s16, 1  ;;  %p1389_p13 = por %p86_p9, %p85_p8 }
  0x26   : > { %p1396_p0 = por %p270_p10, %p79_p1  ;;  %p1400_p2 = por %p276_p11, %p85_p8 }
  0x27   : > { %p283_p4 = scmp.lt.s32.totalorder %s1241_s16, 3  ;;  %s1562_s4 = sld [smem:[#allocation25_spill]] }
  0x28   : > { %s1558_s24 = scalar_select %p1396_p0, 1, 0 }
  0x29   : > { %s1560_s29 = scalar_select %p1400_p2, 1, 0 }
  0x2a   : > { %1559 = sst [smem:[#allocation21_spill]] %s1558_s24  ;;  %p1408_p5 = pnand %p874_p12, %p283_p4 }
  0x2b   : > { %1561 = sst [smem:[#allocation22_spill]] %s1560_s29  ;;  %s1245_s28 = smov [#allocation9]  }
  0x2c   : > { %p942_p1 = pneg %p1408_p5  ;;  %s299_s27 = sshll.u32 %s1245_s28, 4  ;;  %s300_s27 = int_to_ptr.vmem [resolvable:$true] %s299_s27 }
  0x2d   : > { %s297_s23 = sshll.u32 %s1562_s4, 4  ;;  %s877_s30 = sshll.u32 %s1348_s19, 4  ;;  %s298_s23 = int_to_ptr.hbm [resolvable:$true] %s297_s23 }
  0x2e   : > { %p943_p6 = pnand %p942_p1, %p86_p9  ;;  %s908_s25 = sshll.u32 %s1237_s15, 4 }
  0x2f   : > { %s1246_s17 = smov 128   ;;  %s1247_s18 = smov 8  }
  0x30   : > { %945 = dma.hbm_to_vmem [thread:$0]  (!%p943_p6), %s298_s23, 2048, %s300_s27, [#allocation10], %s1246_s17, %s1246_s17, %s1247_s18  }
  0x31   : > { %s336_s13 = scalar_lea.hbm %s1525_s1, %s908_s25  ;;  %s329_s16 = scalar_lea.vmem [#allocation3], %s877_s30 }
  0x32   : > { %s339_s29 = sshll.u32 %s329_s16, 4  ;;  %s337_s11 = sshll.u32 %s336_s13, 4  ;;  %s340_s29 = int_to_ptr.vmem [resolvable:$true] %s339_s29  ;;  %s338_s11 = int_to_ptr.hbm [resolvable:$true] %s337_s11 }
  0x33   : > { %s326_s28 = scalar_lea.sflag [#allocation4], %s1348_s19  ;;  %s1564_s24 = smov 4  }
  0x34   : > { %949 = dma.hbm_to_vmem [thread:$0]  (!%p1350_p7), %s338_s11, 256, %s340_s29, %s326_s28, %s1246_s17, %s1246_s17, %s1247_s18  }
  0x35   : > { %s1565_s9 = smov 64   ;;  %397 = sbr.rel (%p1408_p5) target bundleno = 664 (0x298), region = 56 }
  0x36   : > { %955 = dma.hbm_to_vmem [thread:$0]  (!%p1350_p7), %s1376_s21, 128, %s1374_s2, %s1363_s10, %s1565_s9, %s1565_s9, %s1564_s24  }
  0x37   : > { %s1435_s3 = sand.u32 (!%p1408_p5), 1, %s1225_s12  }
  0x38   : > { %s887_s4 = sshll.u32 (!%p1408_p5), %s1435_s3, 4  ;;  %s400_s13 = scalar_lea.sflag (!%p1408_p5), [#allocation4], %s1435_s3 }
  0x39   : > { %s1441_s16 = scalar_lea.vmem (!%p1408_p5), [#allocation3], %s887_s4 }
  0x3a   : > { %1204 = dma.done.wait (%p1389_p13), %s400_s13, 256  }
  0x3b   : > { %1206 = vsyncadd (%p1389_p13), %s400_s13, 4294967040  ;;  %s409_s2 = sand.u32 1, %s1379_s0   ;;  %s888_s9 = sshll.u32 %s1435_s3, 3 }
  0x3c   : > { %s410_s11 = scalar_lea.sflag [#allocation7], %s409_s2  ;;  %s413_s19 = scalar_lea.vmem [#allocation6], %s888_s9 }
  0x3d   : > { %1208 = dma.done.wait (%p1389_p13), %s410_s11, 256  }
  0x3e   : > { %1210 = vsyncadd (%p1389_p13), %s410_s11, 4294967040  ;;  %s423_s20 = scalar_lea.vmem [#allocation8], %s888_s9 }
  0x3f   : > { %1212 = dma.done.wait (%p86_p9), [#allocation10], 2048  }
  0x40   : > { %1214 = vsyncadd (%p86_p9), [#allocation10], 4294965248  ;;  %v912_v0 = vld [vmem:[%s423_s20] sm:$0xff]  ;;  %v911_v2 = vld [vmem:[%s413_s19] sm:$0xff]  ;;  %vm494_vm0 = vcmask 130048   ;;  %s478_s0 = sld [smem:[#allocation2]] }
  0x41   : > { %v535_v1 = vld [vmem:[#allocation9 + $0x78] sm:$0xff]  ;;  %v534_v3 = vld [vmem:[#allocation9 + $0x70] sm:$0xff]  ;;  %505 = vmatpush.bf16.msra.mxu0 %v912_v0  ;;  %v533_v4 = vld [vmem:[#allocation9 + $0x68] sm:$0xff]  ;;  %s473_s27 = scalar_lea.vmem [#allocation11], %s887_s4  ;;  %s913_s30 = sshll.u32 %s1233_s14, 4 }
  0x42   : > { %540 = vmatpush.msra.mxu1 %v535_v1  ;;  %914 = vmatpush.msra.mxu2 %v535_v1  ;;  %v532_v5 = vld [vmem:[#allocation9 + $0x60] sm:$0xff]  ;;  %v531_v6 = vld [vmem:[#allocation9 + $0x58] sm:$0xff]  ;;  %v530_v7 = vld [vmem:[#allocation9 + $0x50] sm:$0xff]  ;;  %s1566_s13 = sld [smem:[#allocation26_spill]]  ;;  %s726_s11 = sshll.u32 %s473_s27, 4  ;;  %s727_s11 = int_to_ptr.vmem [resolvable:$true] %s726_s11 }
  0x43   : > { %v529_v8 = vld [vmem:[#allocation9 + $0x48] sm:$0xff]  ;;  %v528_v9 = vld [vmem:[#allocation9 + $0x40] sm:$0xff]  ;;  %v527_v10 = vld [vmem:[#allocation9 + $0x38] sm:$0xff]  ;;  %s712_s14 = scalar_lea.sflag [#allocation5], %s1435_s3 }
  0x44   : > { %541 = vmatpush.msra.mxu1 %v534_v3  ;;  %915 = vmatpush.msra.mxu2 %v534_v3  ;;  %v526_v11 = vld [vmem:[#allocation9 + $0x30] sm:$0xff]  ;;  %v525_v12 = vld [vmem:[#allocation9 + $0x28] sm:$0xff]  ;;  %v524_v13 = vld [vmem:[#allocation9 + $0x20] sm:$0xff] }
  0x45   : > { %900 = vmatmul.msk.bf16.vlgmr.msra.gmra.mxu0 %vm494_vm0, %v911_v2  ;;  %v523_v14 = vld [vmem:[#allocation9 + $0x18] sm:$0xff]  ;;  %v522_v15 = vld [vmem:[#allocation9 + $0x10] sm:$0xff]  ;;  %v521_v16 = vld [vmem:[#allocation9 + $0x8] sm:$0xff] }
  0x46   : > { %542 = vmatpush.msra.mxu1 %v533_v4  ;;  %916 = vmatpush.msra.mxu2 %v533_v4  ;;  %v520_v17 = vld [vmem:[#allocation9] sm:$0xff]  ;;  %s514_s10 = sadd.f32 1.0, %s478_s0  ;;  %v513_v24 = vld [vmem:[%s1441_s16 + $0x8] sm:$0xff] }
  0x47   : > { %v512_v20 = vld [vmem:[%s1441_s16] sm:$0xff] }
  0x48   : > { %543 = vmatpush.msra.mxu1 %v532_v5  ;;  %917 = vmatpush.msra.mxu2 %v532_v5  ;;  %v515_v18 = vstv %s514_s10  ;;  %v1019_v27 = vld [vmem:[%s1529_s5] ss:$0 sm:$0xff]  ;;  %s1567_s2 = smov %s1566_s13  ;;  %s725_s16 = scalar_lea.hbm %s1566_s13, %s913_s30 }
  0x49   : > { %s728_s19 = sshll.u32 %s725_s16, 4  ;;  %s1171_s17 = scalar_lea.hbm %s1567_s2, 32  ;;  %s729_s19 = int_to_ptr.hbm [resolvable:$true] %s728_s19 }
  0x4a   : > { %544 = vmatpush.msra.mxu1 %v531_v6  ;;  %918 = vmatpush.msra.mxu2 %v531_v6  ;;  %s1165_s4 = sshra.s32 %s729_s19, 4  ;;  %s1166_s4 = int_to_ptr.hbm [resolvable:$true] %s1165_s4 }
  0x4b   : > { %s1167_s20 = scalar_lea.hbm %s1166_s4, 16  ;;  %p1172_p10 = scmp.lt.s32.totalorder %s1166_s4, %s1567_s2 }
  0x4c   : > { %545 = vmatpush.msra.mxu1 %v530_v7  ;;  %919 = vmatpush.msra.mxu2 %v530_v7  ;;  %p1168_p7 = scmp.ne.s32.totalorder %s1166_s4, %s1167_s20  ;;  %p1173_p11 = scmp.lt.s32.totalorder %s1171_s17, %s1167_s20 }
  0x4e   : > { %546 = vmatpush.msra.mxu1 %v529_v8  ;;  %920 = vmatpush.msra.mxu2 %v529_v8  ;;  %p1169_p8 = pnand %p1168_p7, %p1396_p0  ;;  %p1174_p12 = por %p1173_p11, %p1172_p10 }
  0x50   : > { %547 = vmatpush.msra.mxu1 %v528_v9  ;;  %921 = vmatpush.msra.mxu2 %v528_v9  ;;  %p1170_p9 = pneg %p1169_p8 }
  0x52   : > { %548 = vmatpush.msra.mxu1 %v527_v10  ;;  %922 = vmatpush.msra.mxu2 %v527_v10  ;;  %p1175_p13 = pnand %p1174_p12, %p1170_p9 }
  0x54   : > { %549 = vmatpush.msra.mxu1 %v526_v11  ;;  %923 = vmatpush.msra.mxu2 %v526_v11 }
  0x56   : > { %550 = vmatpush.msra.mxu1 %v525_v12  ;;  %924 = vmatpush.msra.mxu2 %v525_v12 }
  0x58   : > { %551 = vmatpush.msra.mxu1 %v524_v13  ;;  %925 = vmatpush.msra.mxu2 %v524_v13 }
  0x5a   : > { %552 = vmatpush.msra.mxu1 %v523_v14  ;;  %926 = vmatpush.msra.mxu2 %v523_v14 }
  0x5c   : > { %553 = vmatpush.msra.mxu1 %v522_v15  ;;  %927 = vmatpush.msra.mxu2 %v522_v15 }
  0x5e   : > { %554 = vmatpush.msra.mxu1 %v521_v16  ;;  %928 = vmatpush.msra.mxu2 %v521_v16 }
  0x60   : > { %555 = vmatpush.msra.mxu1 %v520_v17  ;;  %929 = vmatpush.msra.mxu2 %v520_v17 }
  0xc2   : > { %v507_v19 = vpop.f32.mrf.mxu0 }
  0xc3   : > { %v516_v21 = vmul.f32 %v515_v18, %v507_v19 }
  0xc5   : > { %v518_v22 = vadd.f32 %v516_v21, %v512_v20 }
  0xc7   : > { %556 = vmatmul.f32.vlgmr.msra.gmra.mxu1 %v518_v22 }
  0xca   : > { %v509_v23 = vpop.f32.mrf.mxu0 }
  0xcb   : > { %v517_v25 = vmul.f32 %v515_v18, %v509_v23 }
  0xcd   : > { %v519_v26 = vadd.f32 %v517_v25, %v513_v24 }
  0xcf   : > { %559 = vmatmul.f32.vlgmr.msra.gmra.mxu2 %v519_v26 }
 0x144   : > { %v557_v28 = vpop.f32.mrf.mxu1 }
 0x145   : > { %v1462_v29 = vadd.f32 %v1019_v27, %v557_v28 }
 0x147   : > { %v568_v30 = vmul.f32 0.70710677, %v1462_v29  ;;  %v566_v26 = vmul.f32 0.5, %v1462_v29 }
 0x149   : > { %v570_v31 = vmul.f32 %v568_v30, %v568_v30 }
 0x14b   : > { %v571_v32 = vmin.f32 %v570_v31, 16.0 }
 0x14d   : > { %v572_v33 = vmul.f32 2.1237322e-06, %v571_v32  ;;  %v583_v34 = vmul.f32 3.8918573e-05, %v571_v32 }
 0x14f   : > { %v573_v35 = vadd.f32 0.00028619796, %v572_v33  ;;  %v584_v36 = vadd.f32 0.001143296, %v583_v34 }
 0x151   : > { %v574_v37 = vmul.f32 %v573_v35, %v571_v32  ;;  %v585_v38 = vmul.f32 %v584_v36, %v571_v32 }
 0x152   : > { %v560_v39 = vpop.f32.mrf.mxu2 }
 0x153   : > { %v575_v40 = vadd.f32 0.0036580483, %v574_v37  ;;  %v1465_v41 = vadd.f32 %v1019_v27, %v560_v39  ;;  %v586_v42 = vadd.f32 0.014752088, %v585_v38 }
 0x155   : > { %v1468_v43 = vmul.f32 0.70710677, %v1465_v41  ;;  %v587_v44 = vmul.f32 %v586_v42, %v571_v32  ;;  %v576_v45 = vmul.f32 %v575_v40, %v571_v32 }
 0x157   : > { %v610_v46 = vmul.f32 %v1468_v43, %v1468_v43  ;;  %v588_v47 = vadd.f32 0.112945676, %v587_v44  ;;  %v577_v50 = vadd.f32 0.05243302, %v576_v45  ;;  %v567_v45 = vmul.f32 0.5, %v1465_v41 }
 0x159   : > { %v611_v48 = vmin.f32 %v610_v46, 16.0  ;;  %v589_v49 = vmul.f32 %v588_v47, %v571_v32  ;;  %v578_v57 = vmul.f32 %v577_v50, %v571_v32 }
 0x15b   : > { %v612_v51 = vmul.f32 2.1237322e-06, %v611_v48  ;;  %v590_v52 = vadd.f32 0.4994258, %v589_v49  ;;  %v623_v53 = vmul.f32 3.8918573e-05, %v611_v48 }
 0x15c   : > { %v579_v62 = vadd.f32 0.18741608, %v578_v57 }
 0x15d   : > { %v613_v54 = vadd.f32 0.00028619796, %v612_v51  ;;  %v591_v55 = vmul.f32 %v590_v52, %v571_v32  ;;  %v624_v56 = vadd.f32 0.001143296, %v623_v53  ;;  %v1020_v51 = vld [vmem:[%s1530_s6] ss:$0 sm:$0xff] }
 0x15e   : > { %v580_v3 = vmul.f32 %v579_v62, %v571_v32 }
 0x15f   : > { %v614_v58 = vmul.f32 %v613_v54, %v611_v48  ;;  %v592_v59 = vadd.f32 1.0, %v591_v55  ;;  %v625_v60 = vmul.f32 %v624_v56, %v611_v48 }
 0x160   : > { %v581_v9 = vadd.f32 1.1283791, %v580_v3 }
 0x161   : > { %1023 = vrcp.f32 %v592_v59  ;;  %v626_v61 = vadd.f32 0.014752088, %v625_v60  ;;  %v615_v63 = vadd.f32 0.0036580483, %v614_v58  ;;  %v604_v11 = vand.u32 2147483648, %v592_v59 }
 0x162   : > { %v602_v13 = vand.u32 2147483647, %v592_v59  ;;  %vm598_vm2 = vweird.f32 %v592_v59  ;;  %v582_v19 = vmul.f32 %v581_v9, %v568_v30 }
 0x163   : > { %v627_v0 = vmul.f32 %v626_v61, %v611_v48  ;;  %v616_v4 = vmul.f32 %v615_v63, %v611_v48  ;;  %v605_v18 = vor.u32 1.1754944e-38, %v604_v11 }
 0x164   : > { %vm603_vm4 = vcmp.eq.f32.partialorder %v602_v13, 8.507059e+37 }
 0x165   : > { %v628_v1 = vadd.f32 0.112945676, %v627_v0  ;;  %v617_v10 = vadd.f32 0.05243302, %v616_v4 }
 0x167   : > { %v1024_v2 = vpop.eup %1023  ;;  %v629_v6 = vmul.f32 %v628_v1, %v611_v48  ;;  %v618_v17 = vmul.f32 %v617_v10, %v611_v48 }
 0x168   : > { %v594_v5 = vmul.f32 %v1024_v2, %v592_v59  ;;  %vm599_vm1 = vweird.f32 %v1024_v2 }
 0x169   : > { %v630_v8 = vadd.f32 0.4994258, %v629_v6  ;;  %vm600_vm3 = vmor %vm598_vm2, %vm599_vm1  ;;  %v619_v23 = vadd.f32 0.18741608, %v618_v17 }
 0x16a   : > { %v595_v7 = vsub.f32 1.0, %v594_v5  ;;  %v1021_v5 = vld [vmem:[%s1531_s7] ss:$0 sm:$0xff] }
 0x16b   : > { %v631_v14 = vmul.f32 %v630_v8, %v611_v48  ;;  %v620_v28 = vmul.f32 %v619_v23, %v611_v48 }
 0x16c   : > { %v596_v12 = vmul.f32 %v1024_v2, %v595_v7  ;;  %v1022_v7 = vld [vmem:[%s1532_s8] ss:$0 sm:$0xff] }
 0x16d   : > { %v632_v16 = vadd.f32 1.0, %v631_v14  ;;  %v621_v35 = vadd.f32 1.1283791, %v620_v28 }
 0x16e   : > { %v597_v15 = vadd.f32 %v1024_v2, %v596_v12 }
 0x16f   : > { %1025 = vrcp.f32 %v632_v16  ;;  %v644_v34 = vand.u32 2147483648, %v632_v16  ;;  %v642_v30 = vand.u32 2147483647, %v632_v16  ;;  %vm638_vm6 = vweird.f32 %v632_v16 }
 0x170   : > { %v601_v20 = vsel %vm600_vm3, %v1024_v2, %v597_v15  ;;  %v622_v39 = vmul.f32 %v621_v35, %v1468_v43 }
 0x171   : > { %v606_v21 = vsel %vm603_vm4, %v605_v18, %v601_v20  ;;  %v645_v38 = vor.u32 1.1754944e-38, %v644_v34  ;;  %vm643_vm8 = vcmp.eq.f32.partialorder %v642_v30, 8.507059e+37 }
 0x172   : > { %v607_v22 = vmul.f32 %v606_v21, %v582_v19 }
 0x174   : > { %v901_v24 = vclamps-f32 %v607_v22, 1.0 }
 0x175   : > { %v1026_v25 = vpop.eup %1025 }
 0x176   : > { %v650_v27 = vadd.f32 1.0, %v901_v24  ;;  %v634_v31 = vmul.f32 %v1026_v25, %v632_v16  ;;  %vm639_vm5 = vweird.f32 %v1026_v25 }
 0x177   : > { %vm640_vm7 = vmor %vm638_vm6, %vm639_vm5 }
 0x178   : > { %v652_v32 = vmul.f32 %v650_v27, %v566_v26  ;;  %v635_v33 = vsub.f32 1.0, %v634_v31 }
 0x17a   : > { %654 = vadd.xlane.f32.xlu0 %v652_v32  ;;  %v636_v36 = vmul.f32 %v1026_v25, %v635_v33 }
 0x17c   : > { %v637_v37 = vadd.f32 %v1026_v25, %v636_v36 }
 0x17e   : > { %v641_v40 = vsel %vm640_vm7, %v1026_v25, %v637_v37 }
 0x17f   : > { %v646_v29 = vsel %vm643_vm8, %v645_v38, %v641_v40 }
 0x180   : > { %v647_v42 = vmul.f32 %v646_v29, %v622_v39 }
 0x182   : > { %v902_v44 = vclamps-f32 %v647_v42, 1.0 }
 0x184   : > { %v651_v46 = vadd.f32 1.0, %v902_v44 }
 0x186   : > { %v653_v47 = vmul.f32 %v651_v46, %v567_v45 }
 0x188   : > { %656 = vadd.xlane.f32.xlu0 %v653_v47 }
 0x1ed   : > { %v655_v48 = vpop.xlane.xlu0 %654 }
 0x1ee   : > { %v658_v49 = vmul.f32 0.03125, %v655_v48 }
 0x1f0   : > { %v660_v50 = vsub.f32 %v652_v32, %v658_v49 }
 0x1f2   : > { %v662_v52 = vmul.f32 %v660_v50, %v660_v50 }
 0x1f4   : > { %v667_v53 = vmul.f32 %v1020_v51, %v662_v52 }
 0x1f6   : > { %669 = vadd.xlane.f32.xlu1 %v667_v53 }
 0x1fb   : > { %v657_v43 = vpop.xlane.xlu0 %656 }
 0x1fc   : > { %v659_v54 = vmul.f32 0.03125, %v657_v43 }
 0x1fe   : > { %v661_v55 = vsub.f32 %v653_v47, %v659_v54 }
 0x200   : > { %v663_v56 = vmul.f32 %v661_v55, %v661_v55 }
 0x202   : > { %v668_v57 = vmul.f32 %v1020_v51, %v663_v56 }
 0x204   : > { %671 = vadd.xlane.f32.xlu1 %v668_v57 }
 0x269   : > { %v670_v41 = vpop.xlane.xlu1 %669 }
 0x26a   : > { %v673_v58 = vmul.f32 0.03125, %v670_v41 }
 0x26c   : > { %v675_v59 = vadd.f32 1e-05, %v673_v58 }
 0x26e   : > { %1027 = vrsqrt.f32 %v675_v59  ;;  %vm683_vm10 = vweird.f32 %v675_v59 }
 0x274   : > { %v1028_v60 = vpop.eup %1027 }
 0x275   : > { %v678_v61 = vmul.f32 %v1028_v60, %v675_v59  ;;  %vm684_vm9 = vweird.f32 %v1028_v60 }
 0x276   : > { %vm685_vm11 = vmor %vm683_vm10, %vm684_vm9 }
 0x277   : > { %v679_v62 = vmul.f32 %v1028_v60, %v678_v61  ;;  %v672_v63 = vpop.xlane.xlu1 %671 }
 0x278   : > { %v674_v1 = vmul.f32 0.03125, %v672_v63 }
 0x279   : > { %v680_v0 = vmul.f32 0.5, %v679_v62 }
 0x27a   : > { %v676_v3 = vadd.f32 1e-05, %v674_v1 }
 0x27b   : > { %v681_v2 = vsub.f32 1.5, %v680_v0 }
 0x27c   : > { %1029 = vrsqrt.f32 %v676_v3  ;;  %vm693_vm13 = vweird.f32 %v676_v3 }
 0x27d   : > { %v682_v4 = vmul.f32 %v1028_v60, %v681_v2 }
 0x27f   : > { %v686_v6 = vsel %vm685_vm11, %v1028_v60, %v682_v4 }
 0x280   : > { %v697_v8 = vmul.f32 %v686_v6, %v660_v50 }
 0x282   : > { %v702_v9 = vmul.f32 %v1021_v5, %v697_v8  ;;  %v1030_v10 = vpop.eup %1029 }
 0x283   : > { %v688_v12 = vmul.f32 %v1030_v10, %v676_v3  ;;  %vm694_vm12 = vweird.f32 %v1030_v10 }
 0x284   : > { %v707_v11 = vadd.f32 %v1022_v7, %v702_v9  ;;  %vm695_vm14 = vmor %vm693_vm13, %vm694_vm12 }
 0x285   : > { %v689_v13 = vmul.f32 %v1030_v10, %v688_v12 }
 0x286   : > { %709 = vst [vmem:[%s473_s27] sm:$0xff] %v707_v11 }
 0x287   : > { %v690_v14 = vmul.f32 0.5, %v689_v13 }
 0x289   : > { %v691_v15 = vsub.f32 1.5, %v690_v14 }
 0x28b   : > { %v692_v16 = vmul.f32 %v1030_v10, %v691_v15 }
 0x28d   : > { %v696_v17 = vsel %vm695_vm14, %v1030_v10, %v692_v16 }
 0x28e   : > { %v698_v18 = vmul.f32 %v696_v17, %v661_v55 }
 0x290   : > { %v703_v19 = vmul.f32 %v1021_v5, %v698_v18 }
 0x292   : > { %v708_v20 = vadd.f32 %v1022_v7, %v703_v19 }
 0x294   : > { %710 = vst [vmem:[%s473_s27 + $0x8] sm:$0xff] %v708_v20 }
 0x295   : > { %1178 = shalt.err (!%p1175_p13)
}
 0x296   : > { %s1248_s3 = smov 128   ;;  %s1249_s22 = smov 8  }
 0x297   : > { %940 = dma.vmem_to_hbm [thread:$0]  (%p1396_p0), %s727_s11, 256, %s729_s19, %s712_s14, %s1248_s3, %s1248_s3, %s1249_s22  }
 0x298 PF: > { %s1569_s24 = sld [smem:[#allocation16_spill]]  ;;  %p957_p4 = pnand %p876_p3, %p1400_p2 }
 0x299   : > { %s1571_s23 = sld [smem:[#allocation18_spill]] }
 0x29a   : > { %p958_p5 = pneg %p957_p4 }
 0x29e   : > { %s743_s26 = sand.u32 1, %s1569_s24  }
 0x29f   : > { %s744_s27 = scalar_lea.sflag [#allocation5], %s743_s26 }
 0x2a0   : > { %1216 = dma.done.wait (%p958_p5), %s744_s27, 256  }
 0x2a1   : > { %1218 = vsyncadd (%p958_p5), %s744_s27, 4294967040  ;;  %s30_s16 = sadd.s32 1, %s1571_s23   ;;  %s1572_s30 = sld [smem:[#allocation17_spill]] }
 0x2a2   : > { %p27_p1 = scmp.ge.s32.totalorder %s30_s16, 4   ;;  %s1573_s13 = sld [smem:[#allocation20_spill]] }
 0x2a3   : > { %s1574_s25 = sld [smem:[#allocation19_spill]]  ;;  %s1575_s11 = smov %s1225_s12 }
 0x2a4   : > { %s1577_s14 = smov %s1237_s15 }
 0x2a5   :  { %29 = sbr.rel (!%p27_p1) target bundleno = 15 (0xf), region = 129 }
 0x2a7   : > { %s1576_s12 = smov %s1572_s30 }
 0x2a9   : > { %s1578_s15 = smov %s1574_s25 }
 0x2aa   :  { %750 = vsyncpa [#allocation4], 1 }
 0x2ab   :  { %752 = vsyncpa [#allocation4 + $0x1], 1 }
 0x2ac   :  { %753 = vsyncpa [#allocation7], 1 }
 0x2ad   :  { %755 = vsyncpa [#allocation7 + $0x1], 1 }
 0x2ae   :  { %756 = vsyncpa [#allocation10], 1 }
 0x2af   :  { %757 = vsyncpa [#allocation5], 1 }
 0x2b0   :  { %759 = vsyncpa [#allocation5 + $0x1], 1 }

</bundles_post_ra>
